<compile_context>
chip_gen: v7x
topology: tpu7x:2x2x1
jax: 0.10.0
libtpu: 0.0.40
codegen_flags: <defaults>
</compile_context>

<pallas_src>
import functools

import numpy as np
import jax
import jax.numpy as jnp
from jax.experimental import pallas as pl
from jax.experimental.pallas import tpu as pltpu


def xconv_bn_relu_kernel(x_ref, w_ref, p_ref, o_ref, taps_ref, *, N, W, pad, eps):
    """Fused depthwise3x3 -> pointwise1x1 -> BN(train) -> ReLU.

    Shapes (all f32, all VMEM resident; lane axis = flattened H*W):
      x_ref    : (N*Cin,  pad + H*W + pad)  lane-padded, reshape-only layout
      w_ref    : (N*Cout, K_pad)            folded depthwise*pointwise weights,
                                            block-diagonal over batch; column
                                            index = k*N*Cin + n*Cin + ci,
                                            zero-padded to K_pad lanes
      p_ref    : (N*Cout, 3)                packed [b_eff | gamma | beta]
      o_ref    : (N*Cout, H*W)
      taps_ref : (K_pad, H*W)               VMEM im2col scratch
    """
    NC = x_ref.shape[0]                      # N * Cin
    NCout, HW = o_ref.shape
    Cout = NCout // N
    K = 9 * NC
    K_pad = taps_ref.shape[0]
    f32 = jnp.float32

    # ---- boundary masks from a lane iota (no mask operand, no DMA) ---------
    pos = jax.lax.broadcasted_iota(jnp.int32, (1, HW), 1)
    if (W & (W - 1)) == 0:                   # W power of two: cheap bit mask
        w_i = jnp.bitwise_and(pos, W - 1)
    else:
        w_i = jax.lax.rem(pos, W)
    m_top = (pos >= W).astype(f32)           # valid for dh = -1
    m_bot = (pos < HW - W).astype(f32)       # valid for dh = +1
    m_left = (w_i > 0).astype(f32)           # valid for dw = -1
    m_right = (w_i < W - 1).astype(f32)      # valid for dw = +1

    # ---- im2col: 9 masked, shifted taps -> (K_pad, HW) scratch -------------
    # Lane offsets are never 128-aligned, so each slice rides the XLU; the
    # mask multiply rides the VPU; all weight math rides the MXU below.
    for k in range(9):                       # static unroll
        dh, dw = k // 3 - 1, k % 3 - 1
        off = pad + dh * W + dw              # static lane offset
        tap = x_ref[:, off:off + HW]         # (N*Cin, HW)
        m = None
        if dh == -1:
            m = m_top
        elif dh == 1:
            m = m_bot
        if dw == -1:
            m = m_left if m is None else m * m_left
        elif dw == 1:
            m = m_right if m is None else m * m_right
        if m is not None:
            tap = tap * m                    # kill row/col wrap-around
        taps_ref[k * NC:(k + 1) * NC, :] = tap

    if K_pad > K:                            # zero the contraction padding rows
        taps_ref[K:K_pad, :] = jnp.zeros((K_pad - K, HW), f32)

    # ---- depthwise + pointwise as ONE MXU matmul ----------------------------
    y = jnp.dot(w_ref[...], taps_ref[...],
                preferred_element_type=jnp.float32)      # (N*Cout, HW)
    y = y + p_ref[:, 0:1]                                # folded conv biases

    # ---- BatchNorm2d (training-mode batch stats), single pass --------------
    row_s = jnp.sum(y, axis=1, keepdims=True)            # (N*Cout, 1) lane reduce
    row_q = jnp.sum(y * y, axis=1, keepdims=True)
    tot_s = row_s[0:Cout, :]
    tot_q = row_q[0:Cout, :]
    for n in range(1, N):                                # add batch sublane blocks
        tot_s = tot_s + row_s[n * Cout:(n + 1) * Cout, :]
        tot_q = tot_q + row_q[n * Cout:(n + 1) * Cout, :]
    inv_cnt = 1.0 / float(N * HW)
    mean = tot_s * inv_cnt                               # (Cout, 1)
    var = jnp.maximum(tot_q * inv_cnt - mean * mean, 0.0)   # clamp cancellation
    scale = p_ref[0:Cout, 1:2] * jax.lax.rsqrt(var + eps)   # gamma folded in
    shift = p_ref[0:Cout, 2:3] - mean * scale

    # ---- fused scale+shift + ReLU; aligned, unmasked lane-dense stores -----
    for n in range(N):
        r0 = n * Cout
        o_ref[r0:r0 + Cout, :] = jnp.maximum(
            y[r0:r0 + Cout, :] * scale + shift, 0.0).astype(o_ref.dtype)


def _xconv_bn_relu(x_nchw, params, *, eps=1e-5):
    """x_nchw: (N, Cin, H, W) f32 -> (N, Cout, H, W) f32."""
    wdw, bdw, wpw, bpw, gamma, beta = params
    N, Cin, H, W = x_nchw.shape
    Cout = wpw.shape[1]
    HW = H * W
    NC = N * Cin
    NCout = N * Cout
    K = 9 * NC
    K_pad = ((K + 127) // 128) * 128         # lane-align the MXU contraction dim
    pad = max(W + 1, 32)                     # small lane halo (any >= W+1 works)

    # Reshape-only relayout (no transpose): (N,Cin,H,W) -> (N*Cin, H*W), plus a
    # small lane halo so the 9 depthwise taps are static in-bounds slices.
    xp = jnp.pad(x_nchw.reshape(NC, HW), ((0, 0), (pad, pad)))

    # Fold depthwise into pointwise: w_eff[co,k,ci] = wpw[ci,co] * wdw[k,ci],
    # made block-diagonal over the batch so a single
    # (N*Cout, K_pad) @ (K_pad, H*W) matmul performs both convs at once.
    wdw_k = wdw.reshape(9, Cin)                                   # k = kh*3+kw
    w_eff = jnp.transpose(wpw)[:, None, :] * wdw_k[None, :, :]    # (Cout, 9, Cin)
    eye_n = jnp.eye(N, dtype=jnp.float32)
    w_full = jnp.einsum('nm,okc->nokmc', eye_n, w_eff).reshape(NCout, K)
    w_full = jnp.pad(w_full, ((0, 0), (0, K_pad - K)))

    # Packed per-output-channel params: [folded conv bias | gamma | beta],
    # tiled over batch (one small operand instead of five).
    beff = bpw.reshape(-1) + bdw.reshape(-1) @ wpw                # (Cout,)
    p_pack = jnp.tile(
        jnp.stack([beff, gamma.reshape(-1), beta.reshape(-1)], axis=1), (N, 1))

    kernel = functools.partial(xconv_bn_relu_kernel, N=N, W=W, pad=pad, eps=eps)
    out = pl.pallas_call(
        kernel,
        out_shape=jax.ShapeDtypeStruct((NCout, HW), jnp.float32),
        in_specs=[pl.BlockSpec(memory_space=pltpu.MemorySpace.VMEM)] * 3,
        out_specs=pl.BlockSpec(memory_space=pltpu.MemorySpace.VMEM),
        scratch_shapes=[pltpu.VMEM((K_pad, HW), jnp.float32)],
    )(xp, w_full, p_pack)

    # (N*Cout, H*W) -> (N, Cout, H, W): pure reshape, no transpose.
    return out.reshape(N, Cout, H, W)


xconv_bn_relu = jax.jit(_xconv_bn_relu)


def reference_nchw(x_nchw, params):
    """Pure-JAX reference of the PyTorch forward (training-mode BN)."""
    wdw, bdw, wpw, bpw, gamma, beta = params
    x = jnp.transpose(x_nchw, (0, 2, 3, 1))
    N, H, W, C = x.shape
    xpad = jnp.pad(x, ((0, 0), (1, 1), (1, 1), (0, 0)))
    acc = jnp.zeros_like(x)
    for kh in range(3):
        for kw in range(3):
            acc = acc + xpad[:, kh:kh + H, kw:kw + W, :] * wdw[kh, kw, :]
    acc = acc + bdw.reshape(1, 1, 1, C)
    y = jnp.einsum('nhwc,cd->nhwd', acc, wpw,
                   precision=jax.lax.Precision.HIGHEST) + bpw.reshape(1, 1, 1, -1)
    mean = jnp.mean(y, axis=(0, 1, 2), keepdims=True)
    var = jnp.mean((y - mean) ** 2, axis=(0, 1, 2), keepdims=True)
    yn = (y - mean) * jax.lax.rsqrt(var + 1e-5)
    yn = yn * gamma.reshape(1, 1, 1, -1) + beta.reshape(1, 1, 1, -1)
    return jnp.transpose(jnp.maximum(yn, 0.0), (0, 3, 1, 2))


if __name__ == "__main__":
    key = jax.random.PRNGKey(0)
    kx, k1, k2, k3, k4 = jax.random.split(key, 5)

    N, Cin, H, W = 2, 4, 16, 16
    Cout = 16

    x = jax.random.normal(kx, (N, Cin, H, W), jnp.float32)

    # Deterministic synthetic parameters (shapes follow the nn.Module __init__):
    #   conv3x3 (depthwise): torch weight (Cin,1,3,3) -> stored here as (3,3,Cin)
    #   conv1x1 (pointwise): torch weight (Cout,Cin,1,1) -> stored here as (Cin,Cout)
    wdw = 0.2 * jax.random.normal(k1, (3, 3, Cin), jnp.float32)
    bdw = 0.1 * jax.random.normal(k2, (1, Cin), jnp.float32)
    wpw = 0.2 * jax.random.normal(k3, (Cin, Cout), jnp.float32)
    bpw = 0.1 * jax.random.normal(k4, (1, Cout), jnp.float32)
    gamma = (1.0 + 0.05 * jnp.arange(Cout, dtype=jnp.float32)).reshape(1, Cout)
    beta = (0.02 * jnp.arange(Cout, dtype=jnp.float32)).reshape(1, Cout)

    params = (wdw, bdw, wpw, bpw, gamma, beta)

    out = xconv_bn_relu(x, params)
    out = jax.block_until_ready(out)

    ref = jax.block_until_ready(reference_nchw(x, params))
    assert out.shape == (N, Cout, H, W)
    assert np.allclose(np.asarray(out), np.asarray(ref), atol=1e-3, rtol=1e-3)

    print("KERNEL_OK")
</pallas_src>

<mosaic_0001>
module attributes {stable_mosaic.version = 11 : i64} {
  func.func @xconv_bn_relu_kernel(%arg0: memref<8x320xf32, #tpu.memory_space<vmem>>, %arg1: memref<32x128xf32, #tpu.memory_space<vmem>>, %arg2: memref<32x3xf32, #tpu.memory_space<vmem>>, %arg3: memref<32x256xf32, #tpu.memory_space<vmem>>, %arg4: memref<128x256xf32, #tpu.memory_space<vmem>>) attributes {dimension_semantics = [], scalar_prefetch = 0 : i64, scratch_operands = 1 : i64, tpu.core_type = #tpu.core_type<tc>} {
    %0 = tpu.iota {dimensions = array<i32: 1>} : vector<1x256xi32>
    %c15_i32 = arith.constant 15 : i32
    %1 = vector.broadcast %c15_i32 : i32 to vector<1x256xi32>
    %2 = arith.andi %0, %1 : vector<1x256xi32>
    %c16_i32 = arith.constant 16 : i32
    %3 = vector.broadcast %c16_i32 : i32 to vector<1x256xi32>
    %4 = arith.cmpi sge, %0, %3 : vector<1x256xi32>
    %5 = arith.extui %4 : vector<1x256xi1> to vector<1x256xi32>
    %6 = arith.sitofp %5 : vector<1x256xi32> to vector<1x256xf32>
    %c240_i32 = arith.constant 240 : i32
    %7 = vector.broadcast %c240_i32 : i32 to vector<1x256xi32>
    %8 = arith.cmpi slt, %0, %7 : vector<1x256xi32>
    %9 = arith.extui %8 : vector<1x256xi1> to vector<1x256xi32>
    %10 = arith.sitofp %9 : vector<1x256xi32> to vector<1x256xf32>
    %c0_i32 = arith.constant 0 : i32
    %11 = vector.broadcast %c0_i32 : i32 to vector<1x256xi32>
    %12 = arith.cmpi sgt, %2, %11 : vector<1x256xi32>
    %13 = arith.extui %12 : vector<1x256xi1> to vector<1x256xi32>
    %14 = arith.sitofp %13 : vector<1x256xi32> to vector<1x256xf32>
    %c15_i32_0 = arith.constant 15 : i32
    %15 = vector.broadcast %c15_i32_0 : i32 to vector<1x256xi32>
    %16 = arith.cmpi slt, %2, %15 : vector<1x256xi32>
    %17 = arith.extui %16 : vector<1x256xi1> to vector<1x256xi32>
    %18 = arith.sitofp %17 : vector<1x256xi32> to vector<1x256xf32>
    %c0 = arith.constant 0 : index
    %c15 = arith.constant 15 : index
    %19 = vector.load %arg0[%c0, %c15] : memref<8x320xf32, #tpu.memory_space<vmem>>, vector<8x256xf32>
    %20 = arith.mulf %6, %14 : vector<1x256xf32>
    %21 = vector.broadcast %20 : vector<1x256xf32> to vector<8x256xf32>
    %22 = arith.mulf %19, %21 : vector<8x256xf32>
    %c0_1 = arith.constant 0 : index
    %c0_2 = arith.constant 0 : index
    %23 = vector.load %arg4[%c0_1, %c0_2] : memref<128x256xf32, #tpu.memory_space<vmem>>, vector<8x256xf32>
    tpu.vector_store %arg4[%c0_1, %c0_2], %22 {strides = array<i32>} : memref<128x256xf32, #tpu.memory_space<vmem>>, vector<8x256xf32>,
    %c0_3 = arith.constant 0 : index
    %c16 = arith.constant 16 : index
    %24 = vector.load %arg0[%c0_3, %c16] : memref<8x320xf32, #tpu.memory_space<vmem>>, vector<8x256xf32>
    %25 = vector.broadcast %6 : vector<1x256xf32> to vector<8x256xf32>
    %26 = arith.mulf %24, %25 : vector<8x256xf32>
    %c8 = arith.constant 8 : index
    %c0_4 = arith.constant 0 : index
    %27 = vector.load %arg4[%c8, %c0_4] : memref<128x256xf32, #tpu.memory_space<vmem>>, vector<8x256xf32>
    tpu.vector_store %arg4[%c8, %c0_4], %26 {strides = array<i32>} : memref<128x256xf32, #tpu.memory_space<vmem>>, vector<8x256xf32>,
    %c0_5 = arith.constant 0 : index
    %c17 = arith.constant 17 : index
    %28 = vector.load %arg0[%c0_5, %c17] : memref<8x320xf32, #tpu.memory_space<vmem>>, vector<8x256xf32>
    %29 = arith.mulf %6, %18 : vector<1x256xf32>
    %30 = vector.broadcast %29 : vector<1x256xf32> to vector<8x256xf32>
    %31 = arith.mulf %28, %30 : vector<8x256xf32>
    %c16_6 = arith.constant 16 : index
    %c0_7 = arith.constant 0 : index
    %32 = vector.load %arg4[%c16_6, %c0_7] : memref<128x256xf32, #tpu.memory_space<vmem>>, vector<8x256xf32>
    tpu.vector_store %arg4[%c16_6, %c0_7], %31 {strides = array<i32>} : memref<128x256xf32, #tpu.memory_space<vmem>>, vector<8x256xf32>,
    %c0_8 = arith.constant 0 : index
    %c31 = arith.constant 31 : index
    %33 = vector.load %arg0[%c0_8, %c31] : memref<8x320xf32, #tpu.memory_space<vmem>>, vector<8x256xf32>
    %34 = vector.broadcast %14 : vector<1x256xf32> to vector<8x256xf32>
    %35 = arith.mulf %33, %34 : vector<8x256xf32>
    %c24 = arith.constant 24 : index
    %c0_9 = arith.constant 0 : index
    %36 = vector.load %arg4[%c24, %c0_9] : memref<128x256xf32, #tpu.memory_space<vmem>>, vector<8x256xf32>
    tpu.vector_store %arg4[%c24, %c0_9], %35 {strides = array<i32>} : memref<128x256xf32, #tpu.memory_space<vmem>>, vector<8x256xf32>,
    %c0_10 = arith.constant 0 : index
    %c32 = arith.constant 32 : index
    %37 = vector.load %arg0[%c0_10, %c32] : memref<8x320xf32, #tpu.memory_space<vmem>>, vector<8x256xf32>
    %c32_11 = arith.constant 32 : index
    %c0_12 = arith.constant 0 : index
    %38 = vector.load %arg4[%c32_11, %c0_12] : memref<128x256xf32, #tpu.memory_space<vmem>>, vector<8x256xf32>
    tpu.vector_store %arg4[%c32_11, %c0_12], %37 {strides = array<i32>} : memref<128x256xf32, #tpu.memory_space<vmem>>, vector<8x256xf32>,
    %c0_13 = arith.constant 0 : index
    %c33 = arith.constant 33 : index
    %39 = vector.load %arg0[%c0_13, %c33] : memref<8x320xf32, #tpu.memory_space<vmem>>, vector<8x256xf32>
    %40 = vector.broadcast %18 : vector<1x256xf32> to vector<8x256xf32>
    %41 = arith.mulf %39, %40 : vector<8x256xf32>
    %c40 = arith.constant 40 : index
    %c0_14 = arith.constant 0 : index
    %42 = vector.load %arg4[%c40, %c0_14] : memref<128x256xf32, #tpu.memory_space<vmem>>, vector<8x256xf32>
    tpu.vector_store %arg4[%c40, %c0_14], %41 {strides = array<i32>} : memref<128x256xf32, #tpu.memory_space<vmem>>, vector<8x256xf32>,
    %c0_15 = arith.constant 0 : index
    %c47 = arith.constant 47 : index
    %43 = vector.load %arg0[%c0_15, %c47] : memref<8x320xf32, #tpu.memory_space<vmem>>, vector<8x256xf32>
    %44 = arith.mulf %10, %14 : vector<1x256xf32>
    %45 = vector.broadcast %44 : vector<1x256xf32> to vector<8x256xf32>
    %46 = arith.mulf %43, %45 : vector<8x256xf32>
    %c48 = arith.constant 48 : index
    %c0_16 = arith.constant 0 : index
    %47 = vector.load %arg4[%c48, %c0_16] : memref<128x256xf32, #tpu.memory_space<vmem>>, vector<8x256xf32>
    tpu.vector_store %arg4[%c48, %c0_16], %46 {strides = array<i32>} : memref<128x256xf32, #tpu.memory_space<vmem>>, vector<8x256xf32>,
    %c0_17 = arith.constant 0 : index
    %c48_18 = arith.constant 48 : index
    %48 = vector.load %arg0[%c0_17, %c48_18] : memref<8x320xf32, #tpu.memory_space<vmem>>, vector<8x256xf32>
    %49 = vector.broadcast %10 : vector<1x256xf32> to vector<8x256xf32>
    %50 = arith.mulf %48, %49 : vector<8x256xf32>
    %c56 = arith.constant 56 : index
    %c0_19 = arith.constant 0 : index
    %51 = vector.load %arg4[%c56, %c0_19] : memref<128x256xf32, #tpu.memory_space<vmem>>, vector<8x256xf32>
    tpu.vector_store %arg4[%c56, %c0_19], %50 {strides = array<i32>} : memref<128x256xf32, #tpu.memory_space<vmem>>, vector<8x256xf32>,
    %c0_20 = arith.constant 0 : index
    %c49 = arith.constant 49 : index
    %52 = vector.load %arg0[%c0_20, %c49] : memref<8x320xf32, #tpu.memory_space<vmem>>, vector<8x256xf32>
    %53 = arith.mulf %10, %18 : vector<1x256xf32>
    %54 = vector.broadcast %53 : vector<1x256xf32> to vector<8x256xf32>
    %55 = arith.mulf %52, %54 : vector<8x256xf32>
    %c64 = arith.constant 64 : index
    %c0_21 = arith.constant 0 : index
    %56 = vector.load %arg4[%c64, %c0_21] : memref<128x256xf32, #tpu.memory_space<vmem>>, vector<8x256xf32>
    tpu.vector_store %arg4[%c64, %c0_21], %55 {strides = array<i32>} : memref<128x256xf32, #tpu.memory_space<vmem>>, vector<8x256xf32>,
    %cst = arith.constant 0.000000e+00 : f32
    %57 = vector.broadcast %cst : f32 to vector<56x256xf32>
    %c72 = arith.constant 72 : index
    %c0_22 = arith.constant 0 : index
    %58 = vector.load %arg4[%c72, %c0_22] : memref<128x256xf32, #tpu.memory_space<vmem>>, vector<56x256xf32>
    tpu.vector_store %arg4[%c72, %c0_22], %57 {strides = array<i32>} : memref<128x256xf32, #tpu.memory_space<vmem>>, vector<56x256xf32>,
    %c0_23 = arith.constant 0 : index
    %c0_24 = arith.constant 0 : index
    %59 = vector.load %arg1[%c0_23, %c0_24] : memref<32x128xf32, #tpu.memory_space<vmem>>, vector<32x128xf32>
    %c0_25 = arith.constant 0 : index
    %c0_26 = arith.constant 0 : index
    %60 = vector.load %arg4[%c0_25, %c0_26] : memref<128x256xf32, #tpu.memory_space<vmem>>, vector<128x256xf32>
    %cst_27 = arith.constant dense<0.000000e+00> : vector<32x256xf32>
    %61 = tpu.matmul %59, %60, %cst_27 {dimension_numbers = #tpu.dot_dimension_numbers<[1], [0], [0], [1], [0, 0, 1, 1], [], []>} : vector<32x128xf32>, vector<128x256xf32>, vector<32x256xf32> -> vector<32x256xf32>
    %c0_28 = arith.constant 0 : index
    %c0_29 = arith.constant 0 : index
    %62 = vector.load %arg2[%c0_28, %c0_29] : memref<32x3xf32, #tpu.memory_space<vmem>>, vector<32x1xf32>
    %63 = vector.broadcast %62 : vector<32x1xf32> to vector<32x256xf32>
    %64 = arith.addf %61, %63 : vector<32x256xf32>
    %cst_30 = arith.constant dense<0.000000e+00> : vector<32xf32>
    %65 = vector.multi_reduction <add>, %64, %cst_30 [1] : vector<32x256xf32> to vector<32xf32>
    %66 = vector.shape_cast %65 : vector<32xf32> to vector<32x1xf32>
    %67 = arith.mulf %64, %64 : vector<32x256xf32>
    %cst_31 = arith.constant dense<0.000000e+00> : vector<32xf32>
    %68 = vector.multi_reduction <add>, %67, %cst_31 [1] : vector<32x256xf32> to vector<32xf32>
    %69 = vector.shape_cast %68 : vector<32xf32> to vector<32x1xf32>
    %70 = vector.extract_strided_slice %66 {offsets = [0, 0], sizes = [16, 1], strides = [1, 1]} : vector<32x1xf32> to vector<16x1xf32>
    %71 = vector.extract_strided_slice %69 {offsets = [0, 0], sizes = [16, 1], strides = [1, 1]} : vector<32x1xf32> to vector<16x1xf32>
    %72 = vector.extract_strided_slice %66 {offsets = [16, 0], sizes = [16, 1], strides = [1, 1]} : vector<32x1xf32> to vector<16x1xf32>
    %73 = arith.addf %70, %72 : vector<16x1xf32>
    %74 = vector.extract_strided_slice %69 {offsets = [16, 0], sizes = [16, 1], strides = [1, 1]} : vector<32x1xf32> to vector<16x1xf32>
    %75 = arith.addf %71, %74 : vector<16x1xf32>
    %cst_32 = arith.constant 0.001953125 : f32
    %76 = vector.broadcast %cst_32 : f32 to vector<16x1xf32>
    %77 = arith.mulf %73, %76 : vector<16x1xf32>
    %cst_33 = arith.constant 0.001953125 : f32
    %78 = vector.broadcast %cst_33 : f32 to vector<16x1xf32>
    %79 = arith.mulf %75, %78 : vector<16x1xf32>
    %80 = arith.mulf %77, %77 : vector<16x1xf32>
    %81 = arith.subf %79, %80 : vector<16x1xf32>
    %cst_34 = arith.constant 0.000000e+00 : f32
    %82 = vector.broadcast %cst_34 : f32 to vector<16x1xf32>
    %83 = arith.maximumf %81, %82 : vector<16x1xf32>
    %c0_35 = arith.constant 0 : index
    %c1 = arith.constant 1 : index
    %84 = vector.load %arg2[%c0_35, %c1] : memref<32x3xf32, #tpu.memory_space<vmem>>, vector<16x1xf32>
    %cst_36 = arith.constant 9.99999974E-6 : f32
    %85 = vector.broadcast %cst_36 : f32 to vector<16x1xf32>
    %86 = arith.addf %83, %85 : vector<16x1xf32>
    %87 = math.rsqrt %86 : vector<16x1xf32>
    %88 = arith.mulf %84, %87 : vector<16x1xf32>
    %c0_37 = arith.constant 0 : index
    %c2 = arith.constant 2 : index
    %89 = vector.load %arg2[%c0_37, %c2] : memref<32x3xf32, #tpu.memory_space<vmem>>, vector<16x1xf32>
    %90 = arith.mulf %77, %88 : vector<16x1xf32>
    %91 = arith.subf %89, %90 : vector<16x1xf32>
    %92 = vector.extract_strided_slice %64 {offsets = [0, 0], sizes = [16, 256], strides = [1, 1]} : vector<32x256xf32> to vector<16x256xf32>
    %93 = vector.broadcast %88 : vector<16x1xf32> to vector<16x256xf32>
    %94 = arith.mulf %92, %93 : vector<16x256xf32>
    %95 = vector.broadcast %91 : vector<16x1xf32> to vector<16x256xf32>
    %96 = arith.addf %94, %95 : vector<16x256xf32>
    %cst_38 = arith.constant 0.000000e+00 : f32
    %97 = vector.broadcast %cst_38 : f32 to vector<16x256xf32>
    %98 = arith.maximumf %96, %97 : vector<16x256xf32>
    %c0_39 = arith.constant 0 : index
    %c0_40 = arith.constant 0 : index
    %99 = vector.load %arg3[%c0_39, %c0_40] : memref<32x256xf32, #tpu.memory_space<vmem>>, vector<16x256xf32>
    tpu.vector_store %arg3[%c0_39, %c0_40], %98 {strides = array<i32>} : memref<32x256xf32, #tpu.memory_space<vmem>>, vector<16x256xf32>,
    %100 = vector.extract_strided_slice %64 {offsets = [16, 0], sizes = [16, 256], strides = [1, 1]} : vector<32x256xf32> to vector<16x256xf32>
    %101 = vector.broadcast %88 : vector<16x1xf32> to vector<16x256xf32>
    %102 = arith.mulf %100, %101 : vector<16x256xf32>
    %103 = vector.broadcast %91 : vector<16x1xf32> to vector<16x256xf32>
    %104 = arith.addf %102, %103 : vector<16x256xf32>
    %cst_41 = arith.constant 0.000000e+00 : f32
    %105 = vector.broadcast %cst_41 : f32 to vector<16x256xf32>
    %106 = arith.maximumf %104, %105 : vector<16x256xf32>
    %c16_42 = arith.constant 16 : index
    %c0_43 = arith.constant 0 : index
    %107 = vector.load %arg3[%c16_42, %c0_43] : memref<32x256xf32, #tpu.memory_space<vmem>>, vector<16x256xf32>
    tpu.vector_store %arg3[%c16_42, %c0_43], %106 {strides = array<i32>} : memref<32x256xf32, #tpu.memory_space<vmem>>, vector<16x256xf32>,
    return
  }
}

</mosaic_0001>

<bundles_post_ra>
// kernel: _xconv_bn_relu.1
= control target key start
LH: loop header
LB: loop body
LE: loop exit
PB: predicated region body
PF: predicated region fallthrough
CT: control target
= control target key end

     0   :  { %v14_v0 = vlaneseq  ;;  %v743_v1 = vmov 0.0   ;;  %v744_v6 = vmov 1.0   ;;  %s745_s12 = smov 16   ;;  %s746_s13 = smov 15   ;;  %vm87_vm6 = vcmask 130048   ;;  %s946_s0 = inlined_call_operand.vmem [shape: f32[8,320], index: 0, kind: input, shape index: {}]   ;;  %s947_s2 = inlined_call_operand.vmem [shape: f32[32,3], index: 2, kind: input, shape index: {}]   ;;  %s948_s1 = inlined_call_operand.vmem [shape: f32[32,128], index: 1, kind: input, shape index: {}]   ;;  %s949_s3 = inlined_call_operand.vmem [shape: f32[32,256], index: 3, kind: output, shape index: {}]  }
   0x1   :  { %472 = vmatprep.mubr.f32.mxu0 %v743_v1  ;;  %484 = vmatprep.mubr.f32.mxu1 %v743_v1  ;;  %s747_s14 = smov 17   ;;  %s748_s15 = smov 31   ;;  %v797_v21 = vld [vmem:[%s946_s0 + $0x8] sm:$0xff]  ;;  %v802_v22 = vld [vmem:[%s946_s0 + $0x10] sm:$0xff]  ;;  %v809_v24 = vld [vmem:[%s946_s0] sm:$0xff]  ;;  %vm54_vm7 = vcmask 121856  }
   0x2   :  { %v15_v2 = vand.u32 127, %v14_v0  ;;  %s749_s16 = smov 47   ;;  %s750_s17 = smov 33   ;;  %v694_v23 = vpack.i.bf16 %v802_v22, %v797_v21  ;;  %vm122_vm8 = vcmask 138240   ;;  %vm155_vm9 = vcmask 252928  }
   0x3   :  { %s751_s18 = smov 48   ;;  %s752_s23 = smov 49   ;;  %vm207_vm10 = vcmask 269312   ;;  %vm242_vm11 = vcmask 384000   ;;  %vm275_vm12 = vcmask 392192   ;;  %vm310_vm13 = vcmask 400384  }
   0x4   :  { %vm19_vm0 = vcmp.ge.s32.totalorder %v15_v2, 16  ;;  %v16_v3 = vadd.s32 128, %v15_v2  ;;  %v17_v4 = vand.u32 15, %v15_v2  ;;  %s753_s24 = smov 96   ;;  %s754_s0 = smov 112   ;;  %vm71_vm14 = vcmask 924672  }
   0x5   :  { %v619_v5 = vsel %vm19_vm0, 1.0, %v743_v1  ;;  %s755_s27 = smov 113   ;;  %s756_s28 = smov 111   ;;  %vm104_vm15 = vcmask 916480   ;;  %vm139_vm0 = vcmask 908288  }
   0x6   :  { %v674_v7 = vpack.i.bf16 %v744_v6, %v619_v5  ;;  %vm31_vm1 = vcmp.gt.s32.totalorder %v17_v4, 0  ;;  %vm37_vm2 = vcmp.lt.s32.totalorder %v17_v4, 15  ;;  %v18_v10 = vand.u32 15, %v16_v3  ;;  %s757_s29 = smov 97   ;;  %s758_s30 = smov 95  }
   0x7   :  { %v621_v8 = vsel %vm31_vm1, 1.0, %v743_v1  ;;  %v623_v9 = vsel %vm37_vm2, 1.0, %v743_v1  ;;  %vm26_vm5 = vcmp.lt.s32.totalorder %v16_v3, 240  ;;  %s759_s4 = smov 81   ;;  %s760_s5 = smov 79   ;;  %vm172_vm1 = vcmask 793600  }
   0x8   :  { %675 = vrot.lane.b32.xlu1 %v674_v7, %s745_s12  ;;  %v46_v11 = vmul.f32 %v621_v8, %v619_v5  ;;  %v114_v12 = vmul.f32 %v623_v9, %v619_v5  ;;  %vm32_vm3 = vcmp.gt.s32.totalorder %v18_v10, 0  ;;  %vm38_vm4 = vcmp.lt.s32.totalorder %v18_v10, 15  ;;  %s761_s6 = smov 80  }
   0x9   :  { %v622_v13 = vsel %vm32_vm3, 1.0, %v743_v1  ;;  %v624_v15 = vsel %vm38_vm4, 1.0, %v743_v1  ;;  %v620_v17 = vsel %vm26_vm5, 1.0, %v743_v1  ;;  %vm191_vm2 = vcmask 785408  }
   0xa   :  { %50 = vrot.lane.b32.xlu0 %v46_v11, %s746_s13  ;;  %v679_v14 = vpack.i.bf16 %v622_v13, %v621_v8  ;;  %v684_v16 = vpack.i.bf16 %v624_v15, %v623_v9  ;;  %v689_v18 = vpack.i.bf16 %v620_v17, %v744_v6  ;;  %v235_v19 = vmul.f32 %v622_v13, %v620_v17 }
   0xb   :  { %v303_v20 = vmul.f32 %v624_v15, %v620_v17  ;;  %vm224_vm3 = vcmask 777216   ;;  %vm259_vm4 = vcmask 662528   ;;  %vm292_vm5 = vcmask 654336  }
   0xc   :  { %118 = vrot.lane.b32.xlu1 %v114_v12, %s747_s14 }
   0xe   :  { %52 = vrot.lane.b32.xlu0 %v622_v13, %s746_s13 }
  0x10   :  { %680 = vrot.lane.b32.xlu1 %v679_v14, %s748_s15 }
  0x12   :  { %120 = vrot.lane.b32.xlu0 %v624_v15, %s747_s14 }
  0x14   :  { %238 = vrot.lane.b32.xlu1 %v621_v8, %s749_s16 }
  0x16   :  { %685 = vrot.lane.b32.xlu0 %v684_v16, %s750_s17 }
  0x18   :  { %690 = vrot.lane.b32.xlu1 %v689_v18, %s751_s18 }
  0x1a   :  { %240 = vrot.lane.b32.xlu0 %v235_v19, %s749_s16 }
  0x1c   :  { %308 = vrot.lane.b32.xlu1 %v303_v20, %s752_s23  ;;  %v762_v20 = vmov 0  }
  0x1d   :  { %735 = vset.pattern.permute.xlu0 %v762_v20  ;;  %734 = vset.pattern.permute.xlu1 %v762_v20 }
  0x1e   :  { %306 = vrot.lane.b32.xlu0 %v623_v9, %s752_s23 }
  0x22   :  { %695 = vrot.lane.b32.xlu0 %v694_v23, %s753_s24  ;;  %v840_v23 = vld [vmem:[%s947_s2 + $0x8] sm:$0xff] }
  0x26   :  { %185 = vrot.lane.b32.xlu0 %v809_v24, %s753_s24 }
  0x7a   :  { %v676_v25 = vpop.permute.xlu1 %675 }
  0x7b   :  { %v678_v26 = vunpack.i.h.bf16 %v676_v25  ;;  %v677_v27 = vunpack.i.l.bf16 %v676_v25  ;;  %v847_v25 = vld [vmem:[%s947_s2] sm:$0xff] }
  0x7c   :  { %v51_v28 = vpop.permute.xlu0 %50 }
  0x7d   :  { %v88_v29 = vsel %vm87_vm6, %v677_v27, %v678_v26  ;;  %v92_v30 = vmul.f32 %v677_v27, %v809_v24  ;;  %v94_v31 = vmul.f32 %v678_v26, %v802_v22  ;;  %v59_v32 = vmul.f32 %v809_v24, %v51_v28  ;;  %v387_v26 = vld [vmem:[%s947_s2 + $0x18] sm:$0xff] }
  0x7e   :  { %v119_v33 = vpop.permute.xlu1 %118  ;;  %v93_v34 = vmul.f32 %v797_v21, %v88_v29  ;;  %vm327_vm6 = vcmask 646144  }
  0x7f   :  { %v127_v35 = vmul.f32 %v119_v33, %v809_v24  ;;  %98 = vrot.lane.b32.xlu1 %v92_v30, %s754_s0  ;;  %65 = vrot.lane.b32.xlu0 %v59_v32, %s755_s27 }
  0x80   :  { %v53_v36 = vpop.permute.xlu0 %52  ;;  %v699_v37 = vpack.i.bf16 %v94_v31, %v93_v34 }
  0x81   :  { %v55_v38 = vsel %vm54_vm7, %v51_v28, %v53_v36  ;;  %v61_v39 = vmul.f32 %v802_v22, %v53_v36 }
  0x82   :  { %v60_v40 = vmul.f32 %v797_v21, %v55_v38  ;;  %v681_v41 = vpop.permute.xlu1 %680 }
  0x83   :  { %v682_v42 = vunpack.i.l.bf16 %v681_v41  ;;  %700 = vrot.lane.b32.xlu1 %v699_v37, %s754_s0  ;;  %133 = vrot.lane.b32.xlu0 %v127_v35, %s756_s28  ;;  %v683_v44 = vunpack.i.h.bf16 %v681_v41 }
  0x84   :  { %v704_v43 = vpack.i.bf16 %v61_v39, %v60_v40  ;;  %v121_v45 = vpop.permute.xlu0 %120 }
  0x85   :  { %v160_v46 = vmul.f32 %v682_v42, %v809_v24  ;;  %v123_v47 = vsel %vm122_vm8, %v119_v33, %v121_v45  ;;  %v129_v49 = vmul.f32 %v802_v22, %v121_v45  ;;  %v156_v51 = vsel %vm155_vm9, %v682_v42, %v683_v44 }
  0x86   :  { %v128_v48 = vmul.f32 %v797_v21, %v123_v47  ;;  %v239_v50 = vpop.permute.xlu1 %238  ;;  %v162_v56 = vmul.f32 %v683_v44, %v802_v22  ;;  %v161_v61 = vmul.f32 %v797_v21, %v156_v51 }
  0x87   :  { %705 = vrot.lane.b32.xlu0 %v704_v43, %s755_s27  ;;  %166 = vrot.lane.b32.xlu1 %v160_v46, %s757_s29  ;;  %v247_v59 = vmul.f32 %v239_v50, %v809_v24 }
  0x88   :  { %v709_v52 = vpack.i.bf16 %v129_v49, %v128_v48  ;;  %v686_v53 = vpop.permute.xlu0 %685  ;;  %v714_v8 = vpack.i.bf16 %v162_v56, %v161_v61 }
  0x89   :  { %v688_v54 = vunpack.i.h.bf16 %v686_v53  ;;  %v687_v55 = vunpack.i.l.bf16 %v686_v53 }
  0x8a   :  { %v691_v57 = vpop.permute.xlu1 %690 }
  0x8b   :  { %v212_v58 = vmul.f32 %v687_v55, %v809_v24  ;;  %710 = vrot.lane.b32.xlu0 %v709_v52, %s756_s28  ;;  %v693_v60 = vunpack.i.h.bf16 %v691_v57  ;;  %v208_v62 = vsel %vm207_vm10, %v687_v55, %v688_v54  ;;  %v692_v0 = vunpack.i.l.bf16 %v691_v57 }
  0x8c   :  { %v241_v63 = vpop.permute.xlu0 %240  ;;  %v214_v7 = vmul.f32 %v688_v54, %v802_v22  ;;  %v213_v9 = vmul.f32 %v208_v62, %v797_v21 }
  0x8d   :  { %v243_v2 = vsel %vm242_vm11, %v239_v50, %v241_v63  ;;  %v249_v3 = vmul.f32 %v241_v63, %v802_v22  ;;  %218 = vrot.lane.b32.xlu1 %v212_v58, %s758_s30  ;;  %v276_v5 = vsel %vm275_vm12, %v692_v0, %v693_v60  ;;  %v282_v12 = vmul.f32 %v693_v60, %v802_v22 }
  0x8e   :  { %v248_v4 = vmul.f32 %v243_v2, %v797_v21  ;;  %v309_v6 = vpop.permute.xlu1 %308  ;;  %v281_v14 = vmul.f32 %v276_v5, %v797_v21  ;;  %v719_v15 = vpack.i.bf16 %v214_v7, %v213_v9  ;;  %v280_v19 = vmul.f32 %v692_v0, %v809_v24 }
  0x8f   :  { %253 = vrot.lane.b32.xlu0 %v247_v59, %s759_s4 }
  0x90   :  { %v729_v10 = vpack.i.bf16 %v249_v3, %v248_v4  ;;  %v307_v11 = vpop.permute.xlu0 %306  ;;  %v724_v17 = vpack.i.bf16 %v282_v12, %v281_v14 }
  0x91   :  { %715 = vrot.lane.b32.xlu1 %v714_v8, %s757_s29  ;;  %v311_v13 = vsel %vm310_vm13, %v307_v11, %v309_v6  ;;  %v315_v18 = vmul.f32 %v307_v11, %v809_v24  ;;  %v386_v24 = vld [vmem:[%s947_s2 + $0x10] sm:$0xff] }
  0x92   :  { %v316_v16 = vmul.f32 %v311_v13, %v797_v21  ;;  %v317_v21 = vmul.f32 %v309_v6, %v802_v22 }
  0x93   :  { %730 = vrot.lane.b32.xlu0 %v729_v10, %s759_s4 }
  0x94   :  { %v696_v22 = vpop.permute.xlu0 %695 }
  0x95   :  { %720 = vrot.lane.b32.xlu1 %v719_v15, %s758_s30  ;;  %v698_v52 = vunpack.i.h.bf16 %v696_v22  ;;  %v697_v53 = vunpack.i.l.bf16 %v696_v22  ;;  %v350_v22 = vld [vmem:[%s948_s1 + $0x10] sm:$0xff] }
  0x97   :  { %323 = vrot.lane.b32.xlu0 %v316_v16, %s760_s5  ;;  %v193_v2 = vsel %vm191_vm2, %v697_v53, %v698_v52 }
  0x98   :  { %v186_v27 = vpop.permute.xlu0 %185 }
  0x99   :  { %725 = vrot.lane.b32.xlu1 %v724_v17, %s761_s6  ;;  %v192_v0 = vsel %vm191_vm2, %v186_v27, %v697_v53 }
  0x9b   :  { %321 = vrot.lane.b32.xlu0 %v315_v18, %s760_s5 }
  0x9d   :  { %286 = vrot.lane.b32.xlu1 %v280_v19, %s761_s6 }
  0x9f   :  { %395 = vperm.xlu0 %735, %v840_v23  }
  0xa1   :  { %325 = vrot.lane.b32.xlu1 %v317_v21, %s760_s5 }
  0xa5   :  { %390 = vperm.xlu1 %734, %v847_v25  }
  0xa9   :  { %400 = vperm.xlu1 %734, %v386_v24  }
  0xad   :  { %405 = vperm.xlu1 %734, %v387_v26   ;;  %v348_v26 = vld [vmem:[%s948_s1] sm:$0xff] }
  0xf1   :  { %v99_v28 = vpop.permute.xlu1 %98  ;;  %v66_v29 = vpop.permute.xlu0 %65 }
  0xf5   :  { %v701_v30 = vpop.permute.xlu1 %700  ;;  %v134_v31 = vpop.permute.xlu0 %133 }
  0xf6   :  { %v703_v32 = vunpack.i.h.bf16 %v701_v30  ;;  %v702_v33 = vunpack.i.l.bf16 %v701_v30 }
  0xf8   :  { %v106_v39 = vsel %vm104_vm15, %v702_v33, %v703_v32  ;;  %v105_v41 = vsel %vm104_vm15, %v99_v28, %v702_v33  ;;  %v351_v28 = vld [vmem:[%s948_s1 + $0x18] sm:$0xff] }
  0xf9   :  { %v706_v34 = vpop.permute.xlu0 %705  ;;  %v167_v35 = vpop.permute.xlu1 %166 }
  0xfa   :  { %v708_v36 = vunpack.i.h.bf16 %v706_v34  ;;  %v707_v37 = vunpack.i.l.bf16 %v706_v34 }
  0xfc   :  { %v73_v38 = vsel %vm71_vm14, %v707_v37, %v708_v36  ;;  %v72_v40 = vsel %vm71_vm14, %v66_v29, %v707_v37  ;;  %v349_v29 = vld [vmem:[%s948_s1 + $0x8] sm:$0xff]  ;;  %s765_s1 = smov 1  }
  0xfd   :  { %v711_v42 = vpop.permute.xlu0 %710  ;;  %v625_v43 = vpack.c.bf16 %v106_v39, %v73_v38  ;;  %v627_v44 = vpack.c.bf16 %v105_v41, %v72_v40 }
  0xfe   :  { %v713_v47 = vunpack.i.h.bf16 %v711_v42  ;;  %v712_v48 = vunpack.i.l.bf16 %v711_v42 }
  0xff   :  { %v219_v45 = vpop.permute.xlu1 %218  ;;  %626 = vmatprep.subr.bf16.mxu0 %v625_v43  ;;  %641 = vmatprep.subr.bf16.mxu1 %v625_v43 }
 0x100   :  { %628 = vmatpush1.bf16.msra.mxu0 %v627_v44  ;;  %646 = vmatpush1.bf16.msra.mxu1 %v627_v44  ;;  %v141_v54 = vsel %vm139_vm0, %v712_v48, %v713_v47  ;;  %v140_v56 = vsel %vm139_vm0, %v134_v31, %v712_v48 }
 0x101   :  { %v254_v46 = vpop.permute.xlu0 %253 }
 0x103   :  { %v716_v49 = vpop.permute.xlu1 %715 }
 0x104   :  { %v718_v50 = vunpack.i.h.bf16 %v716_v49  ;;  %v717_v51 = vunpack.i.l.bf16 %v716_v49 }
 0x105   :  { %v731_v58 = vpop.permute.xlu0 %730 }
 0x106   :  { %v174_v55 = vsel %vm172_vm1, %v717_v51, %v718_v50  ;;  %v173_v57 = vsel %vm172_vm1, %v167_v35, %v717_v51  ;;  %v733_v3 = vunpack.i.h.bf16 %v731_v58  ;;  %v732_v4 = vunpack.i.l.bf16 %v731_v58 }
 0x107   :  { %v721_v59 = vpop.permute.xlu1 %720  ;;  %v629_v60 = vpack.c.bf16 %v174_v55, %v141_v54  ;;  %v631_v61 = vpack.c.bf16 %v173_v57, %v140_v56 }
 0x108   :  { %v723_v62 = vunpack.i.h.bf16 %v721_v59  ;;  %v722_v63 = vunpack.i.l.bf16 %v721_v59  ;;  %v261_v13 = vsel %vm259_vm4, %v732_v4, %v733_v3  ;;  %v260_v17 = vsel %vm259_vm4, %v254_v46, %v732_v4 }
 0x109   :  { %630 = vmatprep.subr.bf16.mxu0 %v629_v60  ;;  %642 = vmatprep.subr.bf16.mxu1 %v629_v60  ;;  %v324_v12 = vpop.permute.xlu0 %323 }
 0x10a   :  { %632 = vmatpush1.bf16.msra.mxu0 %v631_v61  ;;  %647 = vmatpush1.bf16.msra.mxu1 %v631_v61  ;;  %v226_v5 = vsel %vm224_vm3, %v722_v63, %v723_v62  ;;  %v225_v6 = vsel %vm224_vm3, %v219_v45, %v722_v63 }
 0x10b   :  { %v726_v7 = vpop.permute.xlu1 %725  ;;  %v633_v8 = vpack.c.bf16 %v226_v5, %v193_v2  ;;  %v635_v9 = vpack.c.bf16 %v225_v6, %v192_v0  ;;  %v763_v2 = vmov 1  }
 0x10c   :  { %v728_v10 = vunpack.i.h.bf16 %v726_v7  ;;  %v727_v11 = vunpack.i.l.bf16 %v726_v7  ;;  %736 = vset.pattern.permute.xlu1 %v763_v2 }
 0x10d   :  { %634 = vmatprep.subr.bf16.mxu0 %v633_v8  ;;  %643 = vmatprep.subr.bf16.mxu1 %v633_v8  ;;  %v322_v20 = vpop.permute.xlu0 %321 }
 0x10e   :  { %636 = vmatpush1.bf16.msra.mxu0 %v635_v9  ;;  %648 = vmatpush1.bf16.msra.mxu1 %v635_v9  ;;  %v294_v14 = vsel %vm292_vm5, %v727_v11, %v728_v10  ;;  %v328_v27 = vsel %vm327_vm6, %v322_v20, %v324_v12 }
 0x10f   :  { %v287_v15 = vpop.permute.xlu1 %286  ;;  %v637_v16 = vpack.c.bf16 %v294_v14, %v261_v13 }
 0x110   :  { %v293_v18 = vsel %vm292_vm5, %v287_v15, %v727_v11 }
 0x111   :  { %v639_v19 = vpack.c.bf16 %v293_v18, %v260_v17  ;;  %638 = vmatprep.subr.bf16.mxu0 %v637_v16  ;;  %644 = vmatprep.subr.bf16.mxu1 %v637_v16 }
 0x113   :  { %v326_v21 = vpop.permute.xlu1 %325  ;;  %640 = vmatpush1.bf16.msra.mxu0 %v639_v19  ;;  %649 = vmatpush1.bf16.msra.mxu1 %v639_v19 }
 0x114   :  { %v329_v24 = vsel %vm327_vm6, %v324_v12, %v326_v21 }
 0x115   :  { %424 = vmatprep.subr.mxu0 %v329_v24  ;;  %645 = vmatprep.subr.mxu1 %v329_v24 }
 0x117   :  { %425 = vmatpush1.msra.mxu0 %v328_v27  ;;  %650 = vmatpush1.msra.mxu1 %v328_v27 }
 0x118   :  { %473 = vmatmul.mubr.f32.vlgmr.msra.gmra.mrb[0].mxu0 %v348_v26  ;;  %485 = vmatmul.mubr.f32.vlgmr.msra.gmra.mrb[0].mxu1 %v350_v22 }
 0x119   :  { %490 = vmatprep.mubr.f32.mxu1 %v743_v1  ;;  %478 = vmatprep.mubr.f32.mxu0 %v743_v1 }
 0x11c   :  { %491 = vmatmul.mubr.f32.gmra.mrb[2].mxu1 %v351_v28  ;;  %479 = vmatmul.mubr.f32.gmra.mrb[2].mxu0 %v349_v29  ;;  %v764_v28 = vmov 2  }
 0x11d   :  { %737 = vset.pattern.permute.xlu0 %v764_v28 }
 0x11e   :  { %v396_v38 = vpop.permute.xlu0 %395 }
 0x124   :  { %v391_v30 = vpop.permute.xlu1 %390 }
 0x128   :  { %v401_v31 = vpop.permute.xlu1 %400 }
 0x12c   :  { %v406_v50 = vpop.permute.xlu1 %405 }
 0x1eb   :  { %v474_v32 = vpop.f32.mrb[0].mxu0  ;;  %v486_v33 = vpop.f32.mrb[0].mxu1 }
 0x1ec   :  { %v870_v34 = vadd.f32 %v474_v32, %v391_v30  ;;  %v476_v35 = vpop.f32.mrb[1].mxu0  ;;  %v488_v36 = vpop.f32.mrb[1].mxu1  ;;  %v876_v39 = vadd.f32 %v486_v33, %v401_v31 }
 0x1ed   :  { %v872_v37 = vadd.f32 %v476_v35, %v391_v30  ;;  %v878_v40 = vadd.f32 %v488_v36, %v401_v31 }
 0x1ee   :  { %v509_v1 = vmul.f32 %v870_v34, %v870_v34  ;;  %v513_v55 = vmul.f32 %v876_v39, %v876_v39 }
 0x1ef   :  { %v492_v41 = vpop.f32.mrb[2].mxu1  ;;  %v480_v42 = vpop.f32.mrb[2].mxu0  ;;  %v497_v43 = vadd.f32 %v872_v37, %v870_v34  ;;  %v510_v44 = vmul.f32 %v872_v37, %v872_v37  ;;  %v503_v53 = vadd.f32 %v878_v40, %v876_v39  ;;  %v514_v56 = vmul.f32 %v878_v40, %v878_v40 }
 0x1f0   :  { %v494_v45 = vpop.f32.mrb[3].mxu1  ;;  %v884_v46 = vadd.f32 %v480_v42, %v396_v38  ;;  %v482_v47 = vpop.f32.mrb[3].mxu0  ;;  %v888_v51 = vadd.f32 %v492_v41, %v406_v50 }
 0x1f1   :  { %498 = vadd.xlane.f32.xlu0 %v497_v43  ;;  %v886_v48 = vadd.f32 %v482_v47, %v396_v38  ;;  %v517_v49 = vadd.f32 %v510_v44, %v509_v1  ;;  %v890_v52 = vadd.f32 %v494_v45, %v406_v50  ;;  %v523_v60 = vadd.f32 %v514_v56, %v513_v55 }
 0x1f2   :  { %v511_v57 = vmul.f32 %v884_v46, %v884_v46  ;;  %v515_v62 = vmul.f32 %v888_v51, %v888_v51 }
 0x1f3   :  { %518 = vadd.xlane.f32.xlu1 %v517_v49  ;;  %v500_v54 = vadd.f32 %v886_v48, %v884_v46  ;;  %v512_v58 = vmul.f32 %v886_v48, %v886_v48  ;;  %v506_v59 = vadd.f32 %v890_v52, %v888_v51  ;;  %v516_v63 = vmul.f32 %v890_v52, %v890_v52 }
 0x1f5   :  { %504 = vadd.xlane.f32.xlu0 %v503_v53  ;;  %v520_v61 = vadd.f32 %v512_v58, %v511_v57  ;;  %v526_v0 = vadd.f32 %v516_v63, %v515_v62 }
 0x1f7   :  { %501 = vadd.xlane.f32.xlu1 %v500_v54 }
 0x1f9   :  { %507 = vadd.xlane.f32.xlu0 %v506_v59 }
 0x1fb   :  { %524 = vadd.xlane.f32.xlu1 %v523_v60 }
 0x1fd   :  { %521 = vadd.xlane.f32.xlu0 %v520_v61 }
 0x201   :  { %527 = vadd.xlane.f32.xlu0 %v526_v0 }
 0x27e   :  { %v499_v3 = vpop.xlane.xlu0 %498 }
 0x280   :  { %v519_v4 = vpop.xlane.xlu1 %518 }
 0x282   :  { %v505_v5 = vpop.xlane.xlu0 %504 }
 0x283   :  { %v529_v6 = vadd.f32 %v505_v5, %v499_v3 }
 0x284   :  { %v502_v7 = vpop.xlane.xlu1 %501 }
 0x285   :  { %v533_v9 = vmul.f32 0.001953125, %v529_v6 }
 0x286   :  { %v508_v8 = vpop.xlane.xlu0 %507 }
 0x287   :  { %v530_v11 = vadd.f32 %v508_v8, %v502_v7  ;;  %v537_v14 = vmul.f32 %v533_v9, %v533_v9 }
 0x288   :  { %v525_v10 = vpop.xlane.xlu1 %524 }
 0x289   :  { %v531_v12 = vadd.f32 %v525_v10, %v519_v4  ;;  %v534_v16 = vmul.f32 0.001953125, %v530_v11 }
 0x28a   :  { %v522_v13 = vpop.xlane.xlu0 %521 }
 0x28b   :  { %v535_v15 = vmul.f32 0.001953125, %v531_v12  ;;  %v538_v21 = vmul.f32 %v534_v16, %v534_v16 }
 0x28d   :  { %v539_v17 = vsub.f32 %v535_v15, %v537_v14 }
 0x28e   :  { %v528_v18 = vpop.xlane.xlu0 %527 }
 0x28f   :  { %v541_v19 = vmax.f32 %v539_v17, 0.0  ;;  %v532_v20 = vadd.f32 %v528_v18, %v522_v13 }
 0x291   :  { %v545_v24 = vadd.f32 1e-05, %v541_v19  ;;  %v536_v26 = vmul.f32 0.001953125, %v532_v20 }
 0x293   :  { %739 = vrsqrt.f32 %v545_v24  ;;  %v540_v22 = vsub.f32 %v536_v26, %v538_v21 }
 0x295   :  { %v542_v27 = vmax.f32 %v540_v22, 0.0 }
 0x297   :  { %v546_v29 = vadd.f32 1e-05, %v542_v27 }
 0x299   :  { %741 = vrsqrt.f32 %v546_v29 }
 0x29d   :  { %v740_v30 = vpop.eup %739 }
 0x29e   :  { %v549_v31 = vmul.f32 %v740_v30, %v847_v25 }
 0x2a0   :  { %v551_v32 = vmul.f32 %v549_v31, %v533_v9 }
 0x2a2   :  { %555 = vrot.lane.b32.xlu1 %v551_v32, %s765_s1 }
 0x2a3   :  { %v742_v33 = vpop.eup %741 }
 0x2a4   :  { %v550_v35 = vmul.f32 %v742_v33, %v840_v23 }
 0x2a6   :  { %565 = vperm.xlu1 %736, %v549_v31   ;;  %v552_v36 = vmul.f32 %v550_v35, %v534_v16 }
 0x2a8   :  { %557 = vrot.lane.b32.xlu0 %v552_v36, %s765_s1 }
 0x2aa   :  { %570 = vperm.xlu1 %736, %v550_v35  }
 0x2ae   :  { %738 = vset.pattern.permute.xlu1 %v764_v28 }
 0x314   :  { %v556_v38 = vpop.permute.xlu1 %555 }
 0x315   :  { %v561_v1 = vsub.f32 %v847_v25, %v556_v38 }
 0x317   :  { %579 = vperm.xlu0 %737, %v561_v1  }
 0x31a   :  { %v558_v41 = vpop.permute.xlu0 %557 }
 0x31b   :  { %v562_v42 = vsub.f32 %v840_v23, %v558_v41 }
 0x31d   :  { %584 = vperm.xlu1 %738, %v562_v42  }
 0x325   :  { %v566_v43 = vpop.permute.xlu1 %565 }
 0x326   :  { %v573_v44 = vmul.f32 %v566_v43, %v870_v34  ;;  %v574_v45 = vmul.f32 %v566_v43, %v872_v37  ;;  %v599_v47 = vmul.f32 %v566_v43, %v876_v39  ;;  %v600_v49 = vmul.f32 %v566_v43, %v878_v40 }
 0x329   :  { %v571_v25 = vpop.permute.xlu1 %570 }
 0x32a   :  { %v575_v34 = vmul.f32 %v571_v25, %v884_v46  ;;  %v576_v37 = vmul.f32 %v571_v25, %v886_v48  ;;  %v601_v39 = vmul.f32 %v571_v25, %v888_v51  ;;  %v602_v40 = vmul.f32 %v571_v25, %v890_v52 }
 0x396   :  { %v580_v50 = vpop.permute.xlu0 %579 }
 0x397   :  { %v587_v53 = vadd.f32 %v580_v50, %v573_v44  ;;  %v588_v54 = vadd.f32 %v580_v50, %v574_v45  ;;  %v603_v55 = vadd.f32 %v599_v47, %v580_v50  ;;  %v604_v56 = vadd.f32 %v600_v49, %v580_v50 }
 0x399   :  { %v591_v57 = vmax.f32 %v587_v53, 0.0  ;;  %v592_v58 = vmax.f32 %v588_v54, 0.0  ;;  %v607_v59 = vmax.f32 %v603_v55, 0.0  ;;  %v608_v23 = vmax.f32 %v604_v56, 0.0 }
 0x39b   :  { %595 = vst [vmem:[%s949_s3] sm:$0xff] %v591_v57  ;;  %596 = vst [vmem:[%s949_s3 + $0x8] sm:$0xff] %v592_v58 }
 0x39c   :  { %611 = vst [vmem:[%s949_s3 + $0x20] sm:$0xff] %v607_v59  ;;  %612 = vst [vmem:[%s949_s3 + $0x28] sm:$0xff] %v608_v23  ;;  %v585_v60 = vpop.permute.xlu1 %584 }
 0x39d   :  { %v589_v61 = vadd.f32 %v585_v60, %v575_v34  ;;  %v590_v62 = vadd.f32 %v585_v60, %v576_v37  ;;  %v605_v63 = vadd.f32 %v601_v39, %v585_v60  ;;  %v606_v0 = vadd.f32 %v602_v40, %v585_v60 }
 0x39f   :  { %v593_v2 = vmax.f32 %v589_v61, 0.0  ;;  %v594_v3 = vmax.f32 %v590_v62, 0.0  ;;  %v609_v4 = vmax.f32 %v605_v63, 0.0  ;;  %v610_v5 = vmax.f32 %v606_v0, 0.0 }
 0x3a1   :  { %597 = vst [vmem:[%s949_s3 + $0x10] sm:$0xff] %v593_v2  ;;  %598 = vst [vmem:[%s949_s3 + $0x18] sm:$0xff] %v594_v3 }
 0x3a2   :  { %613 = vst [vmem:[%s949_s3 + $0x30] sm:$0xff] %v609_v4  ;;  %614 = vst [vmem:[%s949_s3 + $0x38] sm:$0xff] %v610_v5 }

</bundles_post_ra>
